<compile_context>
chip_gen: v7x
topology: tpu7x:2x2x1
jax: 0.10.0
libtpu: 0.0.40
codegen_flags: <defaults>
</compile_context>

<pallas_src>
import jax
import jax.numpy as jnp
from jax.experimental import pallas as pl
from jax.experimental.pallas import tpu as pltpu

IN_FEATURES = 36
HIDDEN = 40
OUT_FEATURES = 40


def mlp_kernel(x_ref, w1_ref, b1_ref, w2_ref, b2_ref, o_ref):
    # x block arrives in its natural row-major (tn, 36) f32 layout; cast in-kernel.
    x = x_ref[...].astype(jnp.bfloat16)                              # (tn, 36) bf16

    # Linear(36, 40) + ReLU : MXU matmul (bf16 in, f32 acc), VPU max in f32.
    h = jnp.dot(x, w1_ref[...], preferred_element_type=jnp.float32)  # (tn, 40) f32
    h = jnp.maximum(h + b1_ref[...], 0.0)

    # Linear(40, 40) + Sigmoid : MXU matmul, exp + reciprocal on the EUP slot.
    y = jnp.dot(h.astype(jnp.bfloat16), w2_ref[...],
                preferred_element_type=jnp.float32) + b2_ref[...]    # (tn, 40) f32
    o_ref[...] = pl.reciprocal(1.0 + jnp.exp(-y), approx=True).astype(o_ref.dtype)


def model_forward(x, w1, b1, w2, b2, *, tn=8192):
    """x: (..., 36). w1: (36,40), b1: (40,), w2: (40,40), b2: (40,). Returns (..., 40) f32.

    Weights are stored (in_features, out_features), i.e. transposed w.r.t. torch's
    (out, in), so the math is x @ W + b exactly as in nn.Linear.
    """
    lead = x.shape[:-1]
    x2 = x.reshape(-1, IN_FEATURES)
    n = x2.shape[0]

    # Tile choice: as large as `tn` allows (amortize per-step overhead), but keep
    # >= 2 grid steps when the batch permits (v7x megacore), multiple of 8 sublanes.
    tn_eff = max(8, min(tn, pl.cdiv(pl.cdiv(n, 2), 8) * 8))
    grid = (pl.cdiv(n, tn_eff),)

    w1c = w1.astype(jnp.bfloat16)                        # (36, 40), VMEM-resident
    w2c = w2.astype(jnp.bfloat16)                        # (40, 40), VMEM-resident
    b1c = b1.reshape(1, HIDDEN).astype(jnp.float32)      # (1, 40)
    b2c = b2.reshape(1, OUT_FEATURES).astype(jnp.float32)

    cost = pl.CostEstimate(
        flops=2 * n * (IN_FEATURES * HIDDEN + HIDDEN * OUT_FEATURES),
        transcendentals=n * OUT_FEATURES,
        bytes_accessed=(n * IN_FEATURES * 4              # x in  (f32, read as-is)
                        + n * OUT_FEATURES * 4           # y out (f32)
                        + (IN_FEATURES * HIDDEN + HIDDEN * OUT_FEATURES) * 2
                        + (HIDDEN + OUT_FEATURES) * 4),
    )

    y = pl.pallas_call(
        mlp_kernel,
        out_shape=jax.ShapeDtypeStruct((n, OUT_FEATURES), jnp.float32),
        grid=grid,
        in_specs=[
            # streamed input tile, natural row-major layout (auto double-buffered)
            pl.BlockSpec((tn_eff, IN_FEATURES), lambda i: (i, 0)),
            # weights / biases: constant index_map -> VMEM-resident across the grid
            pl.BlockSpec((IN_FEATURES, HIDDEN), lambda i: (0, 0)),
            pl.BlockSpec((1, HIDDEN), lambda i: (0, 0)),
            pl.BlockSpec((HIDDEN, OUT_FEATURES), lambda i: (0, 0)),
            pl.BlockSpec((1, OUT_FEATURES), lambda i: (0, 0)),
        ],
        # direct (n, 40) output; final ragged block handled by Pallas's masked store
        out_specs=pl.BlockSpec((tn_eff, OUT_FEATURES), lambda i: (i, 0)),
        compiler_params=pltpu.CompilerParams(dimension_semantics=("parallel",)),
        cost_estimate=cost,
    )(x2, w1c, b1c, w2c, b2c)

    return y.reshape(*lead, OUT_FEATURES)


def init_params(key):
    """Deterministic init mirroring torch.nn.Linear's U(-1/sqrt(fan_in), 1/sqrt(fan_in))."""
    k1, k2, k3, k4 = jax.random.split(key, 4)
    bound1 = 1.0 / jnp.sqrt(jnp.float32(IN_FEATURES))
    bound2 = 1.0 / jnp.sqrt(jnp.float32(HIDDEN))
    w1 = jax.random.uniform(k1, (IN_FEATURES, HIDDEN), jnp.float32, -bound1, bound1)
    b1 = jax.random.uniform(k2, (HIDDEN,), jnp.float32, -bound1, bound1)
    w2 = jax.random.uniform(k3, (HIDDEN, OUT_FEATURES), jnp.float32, -bound2, bound2)
    b2 = jax.random.uniform(k4, (OUT_FEATURES,), jnp.float32, -bound2, bound2)
    return w1, b1, w2, b2


def reference_forward(x, w1, b1, w2, b2):
    h = jnp.maximum(x @ w1 + b1, 0.0)
    return jax.nn.sigmoid(h @ w2 + b2)


if __name__ == "__main__":
    key = jax.random.PRNGKey(0)
    kx, kp = jax.random.split(key)

    # Small batch, non-multiple of the tile -> exercises 2 grid steps + the
    # Pallas partial (masked) final block.
    batch = 50
    x = jax.random.normal(kx, (batch, IN_FEATURES), jnp.float32)
    w1, b1, w2, b2 = init_params(kp)

    out = jax.block_until_ready(model_forward(x, w1, b1, w2, b2))

    ref = reference_forward(x, w1, b1, w2, b2)
    assert out.shape == (batch, OUT_FEATURES)
    # bf16 MXU feeding + approx reciprocal loosen tolerance vs the pure-f32 reference.
    assert jnp.allclose(out, ref, atol=2e-2, rtol=0), "mismatch vs pure-JAX reference"

    print("KERNEL_OK")
</pallas_src>

<mosaic_0001>
module attributes {stable_mosaic.version = 11 : i64} {
  func.func @mlp_kernel(%arg0: i32, %arg1: memref<32x36xf32, #tpu.memory_space<vmem>>, %arg2: memref<36x40xbf16, #tpu.memory_space<vmem>>, %arg3: memref<1x40xf32, #tpu.memory_space<vmem>>, %arg4: memref<40x40xbf16, #tpu.memory_space<vmem>>, %arg5: memref<1x40xf32, #tpu.memory_space<vmem>>, %arg6: memref<32x40xf32, #tpu.memory_space<vmem>>) attributes {dimension_semantics = [#tpu.dimension_semantics<parallel>], iteration_bounds = array<i64: 2>, scalar_prefetch = 0 : i64, scratch_operands = 0 : i64, tpu.core_type = #tpu.core_type<tc>, window_params = [{transform_indices = @transform_0, window_bounds = array<i64: 32, 36>}, {pipeline_mode = #tpu.pipeline_mode<synchronous>, transform_indices = @transform_1, window_bounds = array<i64: 36, 40>}, {pipeline_mode = #tpu.pipeline_mode<synchronous>, transform_indices = @transform_2, window_bounds = array<i64: 1, 40>}, {pipeline_mode = #tpu.pipeline_mode<synchronous>, transform_indices = @transform_3, window_bounds = array<i64: 40, 40>}, {pipeline_mode = #tpu.pipeline_mode<synchronous>, transform_indices = @transform_4, window_bounds = array<i64: 1, 40>}, {transform_indices = @transform_5, window_bounds = array<i64: 32, 40>}]} {
    %c0 = arith.constant 0 : index
    %c0_0 = arith.constant 0 : index
    %0 = vector.load %arg1[%c0, %c0_0] : memref<32x36xf32, #tpu.memory_space<vmem>>, vector<32x36xf32>
    %1 = arith.truncf %0 : vector<32x36xf32> to vector<32x36xbf16>
    %c0_1 = arith.constant 0 : index
    %c0_2 = arith.constant 0 : index
    %2 = vector.load %arg2[%c0_1, %c0_2] : memref<36x40xbf16, #tpu.memory_space<vmem>>, vector<36x40xbf16>
    %cst = arith.constant dense<0.000000e+00> : vector<32x40xf32>
    %3 = tpu.matmul %1, %2, %cst {dimension_numbers = #tpu.dot_dimension_numbers<[1], [0], [0], [1], [0, 0, 1, 1], [], []>} : vector<32x36xbf16>, vector<36x40xbf16>, vector<32x40xf32> -> vector<32x40xf32>
    %c0_3 = arith.constant 0 : index
    %c0_4 = arith.constant 0 : index
    %4 = vector.load %arg3[%c0_3, %c0_4] : memref<1x40xf32, #tpu.memory_space<vmem>>, vector<1x40xf32>
    %5 = vector.broadcast %4 : vector<1x40xf32> to vector<32x40xf32>
    %6 = arith.addf %3, %5 : vector<32x40xf32>
    %cst_5 = arith.constant 0.000000e+00 : f32
    %7 = vector.broadcast %cst_5 : f32 to vector<32x40xf32>
    %8 = arith.maximumf %6, %7 : vector<32x40xf32>
    %9 = arith.truncf %8 : vector<32x40xf32> to vector<32x40xbf16>
    %c0_6 = arith.constant 0 : index
    %c0_7 = arith.constant 0 : index
    %10 = vector.load %arg4[%c0_6, %c0_7] : memref<40x40xbf16, #tpu.memory_space<vmem>>, vector<40x40xbf16>
    %cst_8 = arith.constant dense<0.000000e+00> : vector<32x40xf32>
    %11 = tpu.matmul %9, %10, %cst_8 {dimension_numbers = #tpu.dot_dimension_numbers<[1], [0], [0], [1], [0, 0, 1, 1], [], []>} : vector<32x40xbf16>, vector<40x40xbf16>, vector<32x40xf32> -> vector<32x40xf32>
    %c0_9 = arith.constant 0 : index
    %c0_10 = arith.constant 0 : index
    %12 = vector.load %arg5[%c0_9, %c0_10] : memref<1x40xf32, #tpu.memory_space<vmem>>, vector<1x40xf32>
    %13 = vector.broadcast %12 : vector<1x40xf32> to vector<32x40xf32>
    %14 = arith.addf %11, %13 : vector<32x40xf32>
    %cst_11 = arith.constant 0.000000e+00 : f32
    %15 = vector.broadcast %cst_11 : f32 to vector<32x40xf32>
    %16 = arith.subf %15, %14 : vector<32x40xf32>
    %17 = math.exp %16 : vector<32x40xf32>
    %cst_12 = arith.constant 1.000000e+00 : f32
    %18 = vector.broadcast %cst_12 : f32 to vector<32x40xf32>
    %19 = arith.addf %18, %17 : vector<32x40xf32>
    %20 = tpu.reciprocal %19 {approx = true} : vector<32x40xf32> -> vector<32x40xf32>
    %c0_13 = arith.constant 0 : index
    %c0_14 = arith.constant 0 : index
    %21 = vector.load %arg6[%c0_13, %c0_14] : memref<32x40xf32, #tpu.memory_space<vmem>>, vector<32x40xf32>
    tpu.vector_store %arg6[%c0_13, %c0_14], %20 {strides = array<i32>} : memref<32x40xf32, #tpu.memory_space<vmem>>, vector<32x40xf32>,
    return
  }
  func.func @transform_0(%arg0: i32) -> (i32, i32) {
    %c0_i32 = arith.constant 0 : i32
    %c0_i32_0 = arith.constant 0 : i32
    return %arg0, %c0_i32 : i32, i32
  }
  func.func @transform_1(%arg0: i32) -> (i32, i32) {
    %c0_i32 = arith.constant 0 : i32
    %c0_i32_0 = arith.constant 0 : i32
    %c0_i32_1 = arith.constant 0 : i32
    return %c0_i32, %c0_i32_0 : i32, i32
  }
  func.func @transform_2(%arg0: i32) -> (i32, i32) {
    %c0_i32 = arith.constant 0 : i32
    %c0_i32_0 = arith.constant 0 : i32
    %c0_i32_1 = arith.constant 0 : i32
    return %c0_i32, %c0_i32_0 : i32, i32
  }
  func.func @transform_3(%arg0: i32) -> (i32, i32) {
    %c0_i32 = arith.constant 0 : i32
    %c0_i32_0 = arith.constant 0 : i32
    %c0_i32_1 = arith.constant 0 : i32
    return %c0_i32, %c0_i32_0 : i32, i32
  }
  func.func @transform_4(%arg0: i32) -> (i32, i32) {
    %c0_i32 = arith.constant 0 : i32
    %c0_i32_0 = arith.constant 0 : i32
    %c0_i32_1 = arith.constant 0 : i32
    return %c0_i32, %c0_i32_0 : i32, i32
  }
  func.func @transform_5(%arg0: i32) -> (i32, i32) {
    %c0_i32 = arith.constant 0 : i32
    %c0_i32_0 = arith.constant 0 : i32
    return %arg0, %c0_i32 : i32, i32
  }
}

</mosaic_0001>

<bundles_post_ra>
// kernel: tpu_custom_call.1
= control target key start
LH: loop header
LB: loop body
LE: loop exit
PB: predicated region body
PF: predicated region fallthrough
CT: control target
= control target key end

     0   :  { %s983_s18 = smov 0   ;;  %s985_s19 = smov 0   ;;  %s1113_s0 = inlined_call_operand.vmem [shape: f32[50,36], index: 0, kind: input, shape index: {}]   ;;  %s1114_s1 = inlined_call_operand.vmem [shape: bf16[36,40], index: 1, kind: input, shape index: {}]   ;;  %s1115_s2 = inlined_call_operand.vmem [shape: f32[1,40], index: 2, kind: input, shape index: {}]   ;;  %s1116_s3 = inlined_call_operand.vmem [shape: bf16[40,40], index: 3, kind: input, shape index: {}]   ;;  %s1117_s4 = inlined_call_operand.vmem [shape: f32[1,40], index: 4, kind: input, shape index: {}]   ;;  %s1118_s5 = inlined_call_operand.vmem [shape: f32[50,40], index: 5, kind: output, shape index: {}]  }
   0x1   :  { %s987_s20 = smov 0  }
   0x2 LB: > { %s996_s21 = sadd.s32 4294967295, %s919_s20   ;;  %s998_s22 = sadd.s32 1, %s919_s20   ;;  %s919_s20 = sphi %s987_s20, %s1125_s20   ;;  %s915_s19 = sphi %s985_s19, %s1124_s19   ;;  %s911_s18 = sphi %s983_s18, %s1123_s18  }
   0x3   : > { %s129_s23 = ssub.s32 %s919_s20, %s998_s22  ;;  %s132_s24 = sadd.s32 1, %s915_s19 }
   0x4   : > { %p130_p0 = scmp.eq.s32.totalorder %s129_s23, 0  ;;  %p142_p1 = scmp.ne.s32.totalorder %s915_s19, %s911_s18 }
   0x5   : > { %p143_p2 = scmp.eq.s32.totalorder %s996_s21, 1  ;;  %p687_p3 = scmp.ge.s32.totalorder %s919_s20, 1 }
   0x6   : > { %s1006_s25 = scalar_select %p130_p0, %s915_s19, %s132_s24  }
   0x7   : > { %p1008_p4 = por %p143_p2, %p142_p1  ;;  %p196_p5 = scmp.lt.s32.totalorder %s919_s20, 3 }
   0x9   : > { %p197_p6 = pnand %p687_p3, %p196_p5 }
   0xa   : > { %v843_v0 = vld [vmem:[%s1114_s1] sm:$0xff] (!%p197_p6)   ;;  %v844_v1 = vld [vmem:[%s1114_s1 + $0x8] sm:$0xff] (!%p197_p6)   ;;  %s1019_s6 = sshll.u32 (!%p197_p6), %s996_s21, 2  ;;  %v845_v2 = vld [vmem:[%s1114_s1 + $0x10] ss:$0 sps:$4 sm:$0x33] (!%p197_p6)  }
   0xb   : > { %200 = sbr.rel (%p197_p6) target bundleno = 543 (0x21f), region = 40  ;;  %733 = vmatprep.subr.bf16.mxu0 (!%p197_p6), %v843_v0  ;;  %p232_p7 = scmp.lt.s32.totalorder (!%p197_p6), %s1019_s6, 6  ;;  %v846_v3 = vld [vmem:[%s1116_s3] sm:$0xff] (!%p197_p6)   ;;  %vm287_vm0 = vcmask (!%p197_p6), 1041408   ;;  %vm280_vm1 = vcmask (!%p197_p6), 293888   ;;  %v847_v11 = vld [vmem:[%s1116_s3 + $0x8] sm:$0xff] (!%p197_p6)  }
   0xc   : > { %734 = vmatpush3.bf16.msra.mxu0 (!%p197_p6), %v843_v0  ;;  %743 = vmatprep.subr.bf16.mxu1 (!%p197_p6), %v846_v3  ;;  %v289_v4 = vsel (!%p197_p6), %vm287_vm0, %v845_v2, 0  ;;  %v848_v12 = vld [vmem:[%s1116_s3 + $0x10] ss:$0 sps:$4 sm:$0xff] (!%p197_p6)   ;;  %vm380_vm2 = vcmask (!%p197_p6), 1043456   ;;  %v691_v14 = vld [vmem:[%s1115_s2] ss:$0 sm:$0xff] (!%p197_p6) }
   0xd   : > { %735 = vmatprep.subr.bf16.mxu0 (!%p197_p6), %v844_v1  ;;  %744 = vmatpush3.bf16.msra.mxu1 (!%p197_p6), %v846_v3  ;;  %v382_v13 = vsel (!%p197_p6), %vm380_vm2, %v848_v12, 0  ;;  %vm373_vm3 = vcmask (!%p197_p6), 326656   ;;  %v697_v29 = vld [vmem:[%s1117_s4] ss:$0 sm:$0xff] (!%p197_p6)  ;;  %s224_s30 = sand.u32 (!%p197_p6), 1, %s911_s18  }
   0xe   : > { %745 = vmatprep.subr.bf16.mxu1 (!%p197_p6), %v847_v11  ;;  %s688_s7 = sshll.u32 (!%p197_p6), %s224_s30, 5 }
   0xf   : > { %s1047_s8 = scalar_lea.vmem (!%p197_p6), [#allocation2], %s688_s7  }
  0x10   : > { %736 = vmatpush3.bf16.msra.mxu0 (!%p197_p6), %v844_v1 }
  0x11   : > { %753 = vmatprep.subr.msk.bf16.mxu0 (!%p197_p6), %vm287_vm0, %v845_v2  ;;  %746 = vmatpush3.bf16.msra.mxu1 (!%p197_p6), %v847_v11 }
  0x12   : > { %s233_s11 = scalar_select %p232_p7, %s1019_s6, 6  ;;  %754 = vmatprep.subr.msk.bf16.mxu1 %vm380_vm2, %v848_v12 }
  0x13   : > { %s465_s18 = ssub.s32 (%p1008_p4), 7, %s1019_s6  ;;  %s720_s9 = sshll.u32 (%p1008_p4), %s996_s21, 5 }
  0x14   : > { %s690_s12 = sshll.u32 %s233_s11, 3  ;;  %738 = vmatpush3.bf16.msra.mxu0 %v289_v4  ;;  %p466_p8 = scmp.lt.s32.totalorder (%p1008_p4), %s465_s18, 4 }
  0x15   : > { %s235_s15 = scalar_lea.vmem %s1113_s0, %s690_s12  ;;  %748 = vmatpush3.bf16.msra.mxu1 %v382_v13  ;;  %s1064_s12 = scalar_lea.vmem (%p1008_p4), %s1118_s5, %s720_s9  }
  0x16   : > { %v247_v5 = vld [vmem:[%s235_s15] sm:$0xff]  ;;  %v248_v6 = vld [vmem:[%s235_s15 + $0x8] sm:$0xff]  ;;  %v249_v7 = vld [vmem:[%s235_s15 + $0x10] sm:$0xff] }
  0x17   : > { %v251_v8 = vpack.c.bf16 %v248_v6, %v247_v5  ;;  %v250_v9 = vld [vmem:[%s235_s15 + $0x18] sm:$0xff] }
  0x18   : > { %v252_v10 = vpack.c.bf16 %v250_v9, %v249_v7 }
  0x19   : > { %739 = vmatprep.mubr.msk.bf16.mxu0 %vm280_vm1, %v251_v8 }
  0x1a   : > { %740 = vmatmul.mubr.msk.bf16.vlgmr.msra.gmra.mrb[0].mxu0 %vm280_vm1, %v252_v10 }
  0xed   : > { %v741_v15 = vpop.f32.mrb[0].mxu0 }
  0xee   : > { %v334_v16 = vadd.f32 %v741_v15, %v691_v14  ;;  %v325_v17 = vpop.f32.mrb[1].mxu0 }
  0xef   : > { %v326_v18 = vadd.f32 %v691_v14, %v325_v17  ;;  %v742_v19 = vpop.f32.mrb[2].mxu0 }
  0xf0   : > { %v337_v20 = vadd.f32 %v742_v19, %v691_v14  ;;  %v328_v21 = vpop.f32.mrb[3].mxu0  ;;  %v342_v23 = vmax.f32 %v334_v16, 0.0 }
  0xf1   : > { %v329_v22 = vadd.f32 %v691_v14, %v328_v21  ;;  %v340_v25 = vmax.f32 %v326_v18, 0.0 }
  0xf2   : > { %v343_v24 = vmax.f32 %v337_v20, 0.0 }
  0xf3   : > { %v341_v26 = vmax.f32 %v329_v22, 0.0 }
  0xf4   : > { %v345_v27 = vpack.c.bf16 %v343_v24, %v342_v23 }
  0xf5   : > { %v344_v28 = vpack.c.bf16 %v341_v26, %v340_v25 }
  0xf7   : > { %749 = vmatprep.mubr.msk.bf16.mxu1 %vm373_vm3, %v344_v28 }
  0xf8   : > { %750 = vmatmul.mubr.msk.bf16.vlgmr.msra.gmra.mrb[0].mxu1 %vm373_vm3, %v345_v27 }
 0x1cb   : > { %v751_v30 = vpop.f32.mrb[0].mxu1 }
 0x1cc   : > { %v427_v31 = vadd.f32 %v751_v30, %v697_v29  ;;  %v418_v32 = vpop.f32.mrb[1].mxu1 }
 0x1cd   : > { %v419_v33 = vadd.f32 %v697_v29, %v418_v32  ;;  %v752_v34 = vpop.f32.mrb[2].mxu1 }
 0x1ce   : > { %v435_v35 = vsub.f32 0.0, %v427_v31  ;;  %v430_v36 = vadd.f32 %v752_v34, %v697_v29  ;;  %v421_v37 = vpop.f32.mrb[3].mxu1 }
 0x1cf   : > { %v433_v38 = vsub.f32 0.0, %v419_v33  ;;  %v422_v39 = vadd.f32 %v697_v29, %v421_v37 }
 0x1d0   : > { %v441_v40 = vmul.f32 1.442695, %v435_v35  ;;  %v436_v41 = vsub.f32 0.0, %v430_v36 }
 0x1d1   : > { %v437_v42 = vmul.f32 1.442695, %v433_v38  ;;  %v434_v43 = vsub.f32 0.0, %v422_v39 }
 0x1d2   : > { %849 = vpow2.f32 %v441_v40  ;;  %v443_v44 = vmul.f32 1.442695, %v436_v41 }
 0x1d3   : > { %851 = vpow2.f32 %v437_v42  ;;  %v439_v45 = vmul.f32 1.442695, %v434_v43 }
 0x1d4   : > { %853 = vpow2.f32 %v443_v44 }
 0x1d5   : > { %855 = vpow2.f32 %v439_v45 }
 0x1dc   : > { %v850_v46 = vpop.eup %849 }
 0x1dd   : > { %v852_v47 = vpop.eup %851  ;;  %v447_v48 = vadd.f32 1.0, %v850_v46 }
 0x1de   : > { %v854_v49 = vpop.eup %853  ;;  %v445_v50 = vadd.f32 1.0, %v852_v47 }
 0x1df   : > { %v856_v51 = vpop.eup %855  ;;  %857 = vrcp.f32 %v447_v48  ;;  %v448_v52 = vadd.f32 1.0, %v854_v49 }
 0x1e0   : > { %859 = vrcp.f32 %v445_v50  ;;  %v446_v53 = vadd.f32 1.0, %v856_v51 }
 0x1e1   : > { %861 = vrcp.f32 %v448_v52 }
 0x1e2   : > { %863 = vrcp.f32 %v446_v53 }
 0x1e7   : > { %463 = sbr.rel (!%p1008_p4) target bundleno = 543 (0x21f), region = 44 }
 0x1e9   : > { %v858_v54 = vpop.eup %857 }
 0x1ea   : > { %v860_v55 = vpop.eup %859  ;;  %455 = vst.msk [vmem:[%s1047_s8 + $0x10] sm:$0xff] %vm373_vm3, %v858_v54 }
 0x1eb   : > { %v862_v56 = vpop.eup %861  ;;  %453 = vst.msk [vmem:[%s1047_s8] sm:$0xff] %vm373_vm3, %v860_v55 }
 0x1ec   : > { %v864_v57 = vpop.eup %863  ;;  %456 = vst.msk [vmem:[%s1047_s8 + $0x18] sm:$0xff] %vm373_vm3, %v862_v56 }
 0x1ed   : > { %454 = vst.msk [vmem:[%s1047_s8 + $0x8] sm:$0xff] %vm373_vm3, %v864_v57 }
 0x1ee   : > { %s1127_s18 = smov (!%p466_p8, %s465_s18), 4 }
 0x1ef   : > { %s705_s13 = sshll.u32 %s1127_s18, 7 }
 0x1f0   : > { %p708_p9 = scmp.eq.s32.totalorder %s705_s13, 0 }
 0x1f1   : > { %s1070_s14 = sshrl.u32 (!%p708_p9), %s1127_s18, 2 }
 0x1f2   : > { %474 = sbr.rel (%p708_p9) target bundleno = 543 (0x21f), region = 48  ;;  %p709_p10 = scmp.le.s32.totalorder (!%p708_p9), %s1070_s14, 0 }
 0x1f9   : > { %640 = sbr.rel (%p709_p10) target bundleno = 522 (0x20a), region = 124  ;;  %s1120_s21 = smov (!%p709_p10), %s1064_s12 }
 0x1fa   : > { %s1121_s26 = smov (!%p709_p10), %s1047_s8  ;;  %s1079_s6 = smov (!%p709_p10), 0  }
 0x1fb   : > { %s933_s15 = smov (!%p709_p10), 0  }
 0x200 LB: >> { %v542_v58 = vld [vmem:[%s927_s26] sm:$0xff]  ;;  %v544_v59 = vld [vmem:[%s927_s26 + $0x8] sm:$0xff]  ;;  %v546_v60 = vld [vmem:[%s927_s26 + $0x10] sm:$0xff]  ;;  %s550_s16 = sadd.s32 1, %s931_s6  ;;  %s536_s15 = sadd.s32 1, %s935_s15   ;;  %s935_s15 = sphi %s933_s15, %s536_s15   ;;  %s931_s6 = sphi %s1079_s6, %s1122_s6   ;;  %s927_s26 = sphi %s1121_s26, %s555_s26   ;;  %s923_s21 = sphi %s1120_s21, %s556_s21  }
 0x201   : >> { %543 = vst [vmem:[%s923_s21] sm:$0xff] %v542_v58  ;;  %545 = vst [vmem:[%s923_s21 + $0x8] sm:$0xff] %v544_v59  ;;  %v548_v61 = vld [vmem:[%s927_s26 + $0x18] sm:$0xff]  ;;  %p551_p11 = scmp.ge.s32.totalorder %s550_s16, %s1070_s14  ;;  %p535_p12 = scmp.ge.s32.totalorder %s536_s15, %s1070_s14 }
 0x202   : >> { %547 = vst [vmem:[%s923_s21 + $0x10] sm:$0xff] %v546_v60  ;;  %549 = vst [vmem:[%s923_s21 + $0x18] sm:$0xff] %v548_v61 }
 0x203   : >> { %s1129_s16 = smov (%p551_p11, %s550_s16), 0  ;;  %538 = sbr.rel (!%p535_p12) target bundleno = 512 (0x200), region = 130 }
 0x204   : >> { %s710_s17 = sshll.u32 %s1129_s16, 5  ;;  %s1122_s6 = smov %s1129_s16 }
 0x205   : >> { %s555_s26 = scalar_lea.vmem %s1047_s8, %s710_s17 [#allocation2]   ;;  %s556_s21 = scalar_lea.vmem %s1064_s12, %s710_s17  }
 0x20a PF: > { %s1095_s20 = sand.u32 3, %s1127_s18   ;;  %s721_s23 = sshll.u32 %s1070_s14, 5 }
 0x20b   : > { %s561_s24 = scalar_lea.vmem %s1047_s8, %s721_s23 [#allocation2]   ;;  %s563_s27 = scalar_lea.vmem %s1064_s12, %s721_s23  }
 0x20c   : > { %p715_p13 = scmp.le.s32.totalorder %s1095_s20, 0 }
 0x20d   : > { %s937_s28 = smov (!%p715_p13), %s563_s27   ;;  %s941_s29 = smov (!%p715_p13), %s561_s24  }
 0x20e   : > { %654 = sbr.rel (%p715_p13) target bundleno = 543 (0x21f), region = 135  ;;  %s945_s30 = smov (!%p715_p13), 0  }
 0x20f   : > { %s949_s7 = smov (!%p715_p13), 0  }
 0x215 LB: >> { %v573_v62 = vld [vmem:[%s943_s29] sm:$0xff]  ;;  %s575_s18 = sadd.s32 1, %s947_s30  ;;  %s567_s7 = sadd.s32 1, %s951_s7   ;;  %s951_s7 = sphi %s949_s7, %s567_s7   ;;  %s947_s30 = sphi %s945_s30, %s946_s30   ;;  %s943_s29 = sphi %s941_s29, %s580_s29   ;;  %s939_s28 = sphi %s937_s28, %s581_s28  }
 0x216   : >> { %574 = vst [vmem:[%s939_s28] sm:$0xff] %v573_v62  ;;  %p576_p0 = scmp.ge.s32.totalorder %s575_s18, %s1095_s20  ;;  %p566_p1 = scmp.ge.s32.totalorder %s567_s7, %s1095_s20 }
 0x218   : >> { %s1131_s18 = smov (%p576_p0, %s575_s18), 0  ;;  %569 = sbr.rel (!%p566_p1) target bundleno = 533 (0x215), region = 141 }
 0x219   : >> { %s716_s8 = sshll.u32 %s1131_s18, 3  ;;  %s946_s30 = smov %s1131_s18  }
 0x21a   : >> { %s580_s29 = scalar_lea.vmem %s561_s24, %s716_s8 [#allocation2]   ;;  %s581_s28 = scalar_lea.vmem %s563_s27, %s716_s8  }
 0x21f PF: > { %p12_p2 = scmp.ge.s32.totalorder %s998_s22, 4   ;;  %s1123_s18 = smov %s915_s19 }
 0x220   : > { %s1124_s19 = smov %s1006_s25  ;;  %s1125_s20 = smov %s998_s22 }
 0x221   :  { %14 = sbr.rel (!%p12_p2) target bundleno = 2 (0x2), region = 152 }

</bundles_post_ra>
